<compile_context>
chip_gen: v7x
topology: tpu7x:2x2x1
jax: 0.10.0
libtpu: 0.0.40
codegen_flags: <defaults>
</compile_context>

<pallas_src>
import functools

import jax
import jax.numpy as jnp
from jax.experimental import pallas as pl
from jax.experimental.pallas import tpu as pltpu

ORIENTATION = 8


def _rechannel_kernel(x_ref, w1_ref, w2_ref, o_ref, sum_acc, max_acc, *,
                      inv_hw, hw, t_hw, needs_mask):
    """Grid = (B, n_hw_tiles); the spatial axis (last grid dim) is the reduction.

    x_ref   : (1, KN, 8, T_HW)  native dtype  -- one batch, one spatial tile
    w1_ref  : (H1, KN) f32      conv1 1x1 weight
    w2_ref  : (KN, H1) f32      conv2 1x1 weight
    o_ref   : (1, KN, 8) f32    written only on the last spatial tile
    sum_acc : (1, KN, 8, T_HW) f32 scratch -- per-lane running sum
    max_acc : (1, KN, 8, T_HW) f32 scratch -- per-lane running max
    """
    h_idx = pl.program_id(1)
    last = pl.num_programs(1) - 1

    x = x_ref[...].astype(jnp.float32)

    if needs_mask:
        # Only traced when HW % T_HW != 0: mask the out-of-bounds lanes of the
        # final tile (0 for the sum branch, -inf for the max branch).
        lane = jax.lax.broadcasted_iota(jnp.int32, x.shape, 3)
        valid = (h_idx * t_hw + lane) < hw
        x_sum = jnp.where(valid, x, 0.0)
        x_max = jnp.where(valid, x, -jnp.inf)
    else:
        x_sum = x
        x_max = x

    # --- steady state: per-lane partial accumulation (VPU only) -------------
    @pl.when(h_idx == 0)
    def _init():
        sum_acc[...] = x_sum
        max_acc[...] = x_max

    @pl.when(h_idx > 0)
    def _accumulate():
        sum_acc[...] = sum_acc[...] + x_sum
        max_acc[...] = jnp.maximum(max_acc[...], x_max)

    # --- epilogue: single cross-lane reduce + tiny fused 1x1-conv MLP --------
    @pl.when(h_idx == last)
    def _finalize():
        avg = jnp.sum(sum_acc[...], axis=-1)[0] * inv_hw      # (KN, 8)
        mx = jnp.max(max_acc[...], axis=-1)[0]                # (KN, 8)

        # Fuse the avg and max branches into one pair of plain 2-D matmuls:
        # columns = [avg orientations | max orientations], contraction over KN.
        pooled = jnp.concatenate([avg, mx], axis=-1)          # (KN, 16)
        h = jnp.dot(w1_ref[...], pooled,
                    preferred_element_type=jnp.float32)       # (H1, 16)
        h = jnp.maximum(h, 0.0)                               # ReLU
        f = jnp.dot(w2_ref[...], h,
                    preferred_element_type=jnp.float32)       # (KN, 16)
        att = f[:, :ORIENTATION] + f[:, ORIENTATION:]         # (KN, 8)
        o_ref[...] = jax.nn.sigmoid(att)[None]                # (1, KN, 8)


def rechannel_normal_conv_v2(x, w1, w2, *, hw_tile=2048):
    """x: (B, C, H, W) NCHW (f32 or bf16); w1: (C//8//r, C//8); w2: (C//8, C//8//r).

    Returns the attention map (B, C, 1, 1) float32 (sigmoid output), with
    channel c = k*8 + o exactly as in the PyTorch module.
    """
    B, C, H, W = x.shape
    assert C % ORIENTATION == 0
    kn = C // ORIENTATION
    hidden = w1.shape[0]
    hw = H * W

    # Channel c = k*8 + o  ->  (kernel k, orientation o); spatial flattened.
    # Pure metadata reshape (contiguous), no extra HBM pass; native dtype kept.
    x_r = x.reshape(B, kn, ORIENTATION, hw)
    w1_f = w1.astype(jnp.float32)
    w2_f = w2.astype(jnp.float32)

    # Spatial tile: full HW if small, otherwise a multiple of 128 lanes so the
    # per-buffer block stays a few MiB (safe for v7x's 64 MiB VMEM / 32 MiB
    # default scoped limit, v5e's 16 MiB scoped default).
    if hw <= hw_tile:
        t_hw = hw
    else:
        t_hw = max(128, (hw_tile // 128) * 128)
    n_hw = pl.cdiv(hw, t_hw)
    needs_mask = (hw % t_hw) != 0

    kernel = functools.partial(
        _rechannel_kernel, inv_hw=1.0 / float(hw), hw=hw, t_hw=t_hw,
        needs_mask=needs_mask)

    itemsize = jnp.dtype(x.dtype).itemsize
    cost = pl.CostEstimate(
        # pooling: one add + one max-compare per input element; MLP is tiny.
        flops=2 * B * C * hw + 8 * B * ORIENTATION * kn * hidden,
        transcendentals=B * C,                      # sigmoid
        bytes_accessed=B * C * hw * itemsize + (w1.size + w2.size + B * C) * 4,
    )

    out = pl.pallas_call(
        kernel,
        out_shape=jax.ShapeDtypeStruct((B, kn, ORIENTATION), jnp.float32),
        grid_spec=pltpu.PrefetchScalarGridSpec(
            num_scalar_prefetch=0,
            grid=(B, n_hw),                         # HW reduction axis last
            in_specs=[
                pl.BlockSpec((1, kn, ORIENTATION, t_hw),
                             lambda b, h: (b, 0, 0, h)),
                pl.BlockSpec((hidden, kn), lambda b, h: (0, 0)),
                pl.BlockSpec((kn, hidden), lambda b, h: (0, 0)),
            ],
            out_specs=pl.BlockSpec((1, kn, ORIENTATION),
                                   lambda b, h: (b, 0, 0)),
            scratch_shapes=[
                pltpu.VMEM((1, kn, ORIENTATION, t_hw), jnp.float32),  # sum
                pltpu.VMEM((1, kn, ORIENTATION, t_hw), jnp.float32),  # max
            ],
        ),
        compiler_params=pltpu.CompilerParams(
            dimension_semantics=("parallel", "arbitrary")),
        cost_estimate=cost,
    )(x_r, w1_f, w2_f)

    # out[b, k, o] corresponds to output channel c = k*ORIENTATION + o.
    return out.reshape(B, C, 1, 1)


def reference(x, w1, w2):
    """Pure-JAX transliteration of the PyTorch forward (loops + concat)."""
    B, C, H, W = x.shape
    kn = C // ORIENTATION
    xf = x.astype(jnp.float32)
    avg = jnp.mean(xf, axis=(2, 3))             # (B, C)
    mx = jnp.max(xf, axis=(2, 3))               # (B, C)

    def branch(pooled):
        feats = []
        for o in range(ORIENTATION):
            v = pooled[:, o::ORIENTATION]       # (B, kn)
            h = jnp.maximum(v @ w1.T, 0.0)      # conv1 (1x1, no bias) + relu
            feats.append(h @ w2.T)              # conv2 (1x1, no bias)
        return jnp.concatenate(feats, axis=1)   # (B, C), ordered [orientation, k]

    f1 = branch(avg)
    f2 = branch(mx)
    atts = []
    for k in range(kn):
        atts.append(f1[:, k::kn] + f2[:, k::kn])    # (B, ORIENTATION)
    att = jnp.concatenate(atts, axis=1)             # (B, C), ordered [k, orientation]
    return jax.nn.sigmoid(att).reshape(B, C, 1, 1)


if __name__ == "__main__":
    # Small shapes consistent with the module: inchannels must be a multiple of 8.
    B, C = 2, 32
    r = 2
    kn = C // ORIENTATION          # 4
    hidden = kn // r               # 2

    key = jax.random.PRNGKey(0)
    kx, k1, k2, kx2 = jax.random.split(key, 4)
    # conv1: (hidden, kn, 1, 1) -> (hidden, kn); conv2: (kn, hidden, 1, 1) -> (kn, hidden).
    w1 = jax.random.normal(k1, (hidden, kn), dtype=jnp.float32) * 0.5
    w2 = jax.random.normal(k2, (kn, hidden), dtype=jnp.float32) * 0.5

    # Case 1: HW = 256, tile = 128  ->  2 spatial tiles, exercises the
    # init / accumulate / finalize pipeline (no masking needed).
    H = W = 16
    x = jax.random.normal(kx, (B, C, H, W), dtype=jnp.float32)
    out = jax.block_until_ready(rechannel_normal_conv_v2(x, w1, w2, hw_tile=128))
    ref = jax.block_until_ready(reference(x, w1, w2))
    assert out.shape == (B, C, 1, 1), out.shape
    assert jnp.allclose(out, ref, atol=1e-5, rtol=1e-5), (
        float(jnp.max(jnp.abs(out - ref))))

    # Case 2: HW = 144, tile = 128  ->  ragged last tile, exercises the
    # -inf / 0 lane masking path.
    H2 = W2 = 12
    x2 = jax.random.normal(kx2, (B, C, H2, W2), dtype=jnp.float32)
    out2 = jax.block_until_ready(rechannel_normal_conv_v2(x2, w1, w2, hw_tile=128))
    ref2 = jax.block_until_ready(reference(x2, w1, w2))
    assert jnp.allclose(out2, ref2, atol=1e-5, rtol=1e-5), (
        float(jnp.max(jnp.abs(out2 - ref2))))

    print("KERNEL_OK")
</pallas_src>

<mosaic_0001>
module attributes {stable_mosaic.version = 11 : i64} {
  func.func @_rechannel_kernel(%arg0: i32, %arg1: i32, %arg2: memref<1x4x8x128xf32, #tpu.memory_space<vmem>>, %arg3: memref<2x4xf32, #tpu.memory_space<vmem>>, %arg4: memref<4x2xf32, #tpu.memory_space<vmem>>, %arg5: memref<1x4x8xf32, #tpu.memory_space<vmem>>, %arg6: memref<1x4x8x128xf32, #tpu.memory_space<vmem>>, %arg7: memref<1x4x8x128xf32, #tpu.memory_space<vmem>>) attributes {dimension_semantics = [#tpu.dimension_semantics<parallel>, #tpu.dimension_semantics<arbitrary>], iteration_bounds = array<i64: 2, 2>, scalar_prefetch = 0 : i64, scratch_operands = 2 : i64, tpu.core_type = #tpu.core_type<tc>, window_params = [{transform_indices = @transform_0, window_bounds = array<i64: 1, 4, 8, 128>}, {pipeline_mode = #tpu.pipeline_mode<synchronous>, transform_indices = @transform_1, window_bounds = array<i64: 2, 4>}, {pipeline_mode = #tpu.pipeline_mode<synchronous>, transform_indices = @transform_2, window_bounds = array<i64: 4, 2>}, {transform_indices = @transform_3, window_bounds = array<i64: 1, 4, 8>}]} {
    %c0 = arith.constant 0 : index
    %c0_0 = arith.constant 0 : index
    %c0_1 = arith.constant 0 : index
    %c0_2 = arith.constant 0 : index
    %0 = vector.load %arg2[%c0, %c0_0, %c0_1, %c0_2] : memref<1x4x8x128xf32, #tpu.memory_space<vmem>>, vector<1x4x8x128xf32>
    %c0_i32 = arith.constant 0 : i32
    %1 = arith.cmpi eq, %arg1, %c0_i32 : i32
    %2 = arith.extui %1 : i1 to i32
    %c0_i32_3 = arith.constant 0 : i32
    %3 = arith.cmpi ne, %2, %c0_i32_3 : i32
    scf.if %3 {
      %c0_7 = arith.constant 0 : index
      %c0_8 = arith.constant 0 : index
      %c0_9 = arith.constant 0 : index
      %c0_10 = arith.constant 0 : index
      %10 = vector.load %arg6[%c0_7, %c0_8, %c0_9, %c0_10] : memref<1x4x8x128xf32, #tpu.memory_space<vmem>>, vector<1x4x8x128xf32>
      tpu.vector_store %arg6[%c0_7, %c0_8, %c0_9, %c0_10], %0 {strides = array<i32>} : memref<1x4x8x128xf32, #tpu.memory_space<vmem>>, vector<1x4x8x128xf32>,
      %c0_11 = arith.constant 0 : index
      %c0_12 = arith.constant 0 : index
      %c0_13 = arith.constant 0 : index
      %c0_14 = arith.constant 0 : index
      %11 = vector.load %arg7[%c0_11, %c0_12, %c0_13, %c0_14] : memref<1x4x8x128xf32, #tpu.memory_space<vmem>>, vector<1x4x8x128xf32>
      tpu.vector_store %arg7[%c0_11, %c0_12, %c0_13, %c0_14], %0 {strides = array<i32>} : memref<1x4x8x128xf32, #tpu.memory_space<vmem>>, vector<1x4x8x128xf32>,
    } else {
    }
    %c0_i32_4 = arith.constant 0 : i32
    %4 = arith.cmpi sgt, %arg1, %c0_i32_4 : i32
    %5 = arith.extui %4 : i1 to i32
    %c0_i32_5 = arith.constant 0 : i32
    %6 = arith.cmpi ne, %5, %c0_i32_5 : i32
    scf.if %6 {
      %c0_7 = arith.constant 0 : index
      %c0_8 = arith.constant 0 : index
      %c0_9 = arith.constant 0 : index
      %c0_10 = arith.constant 0 : index
      %10 = vector.load %arg6[%c0_7, %c0_8, %c0_9, %c0_10] : memref<1x4x8x128xf32, #tpu.memory_space<vmem>>, vector<1x4x8x128xf32>
      %11 = arith.addf %10, %0 : vector<1x4x8x128xf32>
      %c0_11 = arith.constant 0 : index
      %c0_12 = arith.constant 0 : index
      %c0_13 = arith.constant 0 : index
      %c0_14 = arith.constant 0 : index
      %12 = vector.load %arg6[%c0_11, %c0_12, %c0_13, %c0_14] : memref<1x4x8x128xf32, #tpu.memory_space<vmem>>, vector<1x4x8x128xf32>
      tpu.vector_store %arg6[%c0_11, %c0_12, %c0_13, %c0_14], %11 {strides = array<i32>} : memref<1x4x8x128xf32, #tpu.memory_space<vmem>>, vector<1x4x8x128xf32>,
      %c0_15 = arith.constant 0 : index
      %c0_16 = arith.constant 0 : index
      %c0_17 = arith.constant 0 : index
      %c0_18 = arith.constant 0 : index
      %13 = vector.load %arg7[%c0_15, %c0_16, %c0_17, %c0_18] : memref<1x4x8x128xf32, #tpu.memory_space<vmem>>, vector<1x4x8x128xf32>
      %14 = arith.maximumf %13, %0 : vector<1x4x8x128xf32>
      %c0_19 = arith.constant 0 : index
      %c0_20 = arith.constant 0 : index
      %c0_21 = arith.constant 0 : index
      %c0_22 = arith.constant 0 : index
      %15 = vector.load %arg7[%c0_19, %c0_20, %c0_21, %c0_22] : memref<1x4x8x128xf32, #tpu.memory_space<vmem>>, vector<1x4x8x128xf32>
      tpu.vector_store %arg7[%c0_19, %c0_20, %c0_21, %c0_22], %14 {strides = array<i32>} : memref<1x4x8x128xf32, #tpu.memory_space<vmem>>, vector<1x4x8x128xf32>,
    } else {
    }
    %c1_i32 = arith.constant 1 : i32
    %7 = arith.cmpi eq, %arg1, %c1_i32 : i32
    %8 = arith.extui %7 : i1 to i32
    %c0_i32_6 = arith.constant 0 : i32
    %9 = arith.cmpi ne, %8, %c0_i32_6 : i32
    scf.if %9 {
      %c0_7 = arith.constant 0 : index
      %c0_8 = arith.constant 0 : index
      %c0_9 = arith.constant 0 : index
      %c0_10 = arith.constant 0 : index
      %10 = vector.load %arg6[%c0_7, %c0_8, %c0_9, %c0_10] : memref<1x4x8x128xf32, #tpu.memory_space<vmem>>, vector<1x4x8x128xf32>
      %cst = arith.constant dense<0.000000e+00> : vector<1x4x8xf32>
      %11 = vector.multi_reduction <add>, %10, %cst [3] : vector<1x4x8x128xf32> to vector<1x4x8xf32>
      %12 = vector.shape_cast %11 : vector<1x4x8xf32> to vector<4x8xf32>
      %cst_11 = arith.constant 3.906250e-03 : f32
      %13 = vector.broadcast %cst_11 : f32 to vector<4x8xf32>
      %14 = arith.mulf %12, %13 : vector<4x8xf32>
      %c0_12 = arith.constant 0 : index
      %c0_13 = arith.constant 0 : index
      %c0_14 = arith.constant 0 : index
      %c0_15 = arith.constant 0 : index
      %15 = vector.load %arg7[%c0_12, %c0_13, %c0_14, %c0_15] : memref<1x4x8x128xf32, #tpu.memory_space<vmem>>, vector<1x4x8x128xf32>
      %cst_16 = arith.constant dense<0xFF800000> : vector<1x4x8xf32>
      %16 = vector.multi_reduction <maximumf>, %15, %cst_16 [3] : vector<1x4x8x128xf32> to vector<1x4x8xf32>
      %17 = vector.shape_cast %16 : vector<1x4x8xf32> to vector<4x8xf32>
      %18 = tpu.concatenate %14, %17 in 1 : vector<4x8xf32>, vector<4x8xf32> -> vector<4x16xf32>
      %c0_17 = arith.constant 0 : index
      %c0_18 = arith.constant 0 : index
      %19 = vector.load %arg3[%c0_17, %c0_18] : memref<2x4xf32, #tpu.memory_space<vmem>>, vector<2x4xf32>
      %cst_19 = arith.constant dense<0.000000e+00> : vector<2x16xf32>
      %20 = tpu.matmul %19, %18, %cst_19 {dimension_numbers = #tpu.dot_dimension_numbers<[1], [0], [0], [1], [0, 0, 1, 1], [], []>} : vector<2x4xf32>, vector<4x16xf32>, vector<2x16xf32> -> vector<2x16xf32>
      %cst_20 = arith.constant 0.000000e+00 : f32
      %21 = vector.broadcast %cst_20 : f32 to vector<2x16xf32>
      %22 = arith.maximumf %20, %21 : vector<2x16xf32>
      %c0_21 = arith.constant 0 : index
      %c0_22 = arith.constant 0 : index
      %23 = vector.load %arg4[%c0_21, %c0_22] : memref<4x2xf32, #tpu.memory_space<vmem>>, vector<4x2xf32>
      %cst_23 = arith.constant dense<0.000000e+00> : vector<4x16xf32>
      %24 = tpu.matmul %23, %22, %cst_23 {dimension_numbers = #tpu.dot_dimension_numbers<[1], [0], [0], [1], [0, 0, 1, 1], [], []>} : vector<4x2xf32>, vector<2x16xf32>, vector<4x16xf32> -> vector<4x16xf32>
      %25 = vector.extract_strided_slice %24 {offsets = [0, 0], sizes = [4, 8], strides = [1, 1]} : vector<4x16xf32> to vector<4x8xf32>
      %26 = vector.extract_strided_slice %24 {offsets = [0, 8], sizes = [4, 8], strides = [1, 1]} : vector<4x16xf32> to vector<4x8xf32>
      %27 = arith.addf %25, %26 : vector<4x8xf32>
      %28 = arith.negf %27 : vector<4x8xf32>
      %29 = math.exp %28 : vector<4x8xf32>
      %cst_24 = arith.constant 1.000000e+00 : f32
      %30 = vector.broadcast %cst_24 : f32 to vector<4x8xf32>
      %31 = arith.addf %30, %29 : vector<4x8xf32>
      %32 = arith.divf %30, %31 : vector<4x8xf32>
      %33 = vector.shape_cast %32 : vector<4x8xf32> to vector<1x4x8xf32>
      %c0_25 = arith.constant 0 : index
      %c0_26 = arith.constant 0 : index
      %c0_27 = arith.constant 0 : index
      %34 = vector.load %arg5[%c0_25, %c0_26, %c0_27] : memref<1x4x8xf32, #tpu.memory_space<vmem>>, vector<1x4x8xf32>
      tpu.vector_store %arg5[%c0_25, %c0_26, %c0_27], %33 {strides = array<i32>} : memref<1x4x8xf32, #tpu.memory_space<vmem>>, vector<1x4x8xf32>,
    } else {
    }
    return
  }
  func.func @transform_0(%arg0: i32, %arg1: i32) -> (i32, i32, i32, i32) {
    %c0_i32 = arith.constant 0 : i32
    %c0_i32_0 = arith.constant 0 : i32
    %c0_i32_1 = arith.constant 0 : i32
    return %arg0, %c0_i32, %c0_i32_0, %arg1 : i32, i32, i32, i32
  }
  func.func @transform_1(%arg0: i32, %arg1: i32) -> (i32, i32) {
    %c0_i32 = arith.constant 0 : i32
    %c0_i32_0 = arith.constant 0 : i32
    %c0_i32_1 = arith.constant 0 : i32
    return %c0_i32, %c0_i32_0 : i32, i32
  }
  func.func @transform_2(%arg0: i32, %arg1: i32) -> (i32, i32) {
    %c0_i32 = arith.constant 0 : i32
    %c0_i32_0 = arith.constant 0 : i32
    %c0_i32_1 = arith.constant 0 : i32
    return %c0_i32, %c0_i32_0 : i32, i32
  }
  func.func @transform_3(%arg0: i32, %arg1: i32) -> (i32, i32, i32) {
    %c0_i32 = arith.constant 0 : i32
    %c0_i32_0 = arith.constant 0 : i32
    %c0_i32_1 = arith.constant 0 : i32
    return %arg0, %c0_i32, %c0_i32_0 : i32, i32, i32
  }
}

</mosaic_0001>

<bundles_post_ra>
// kernel: tpu_custom_call.1
= control target key start
LH: loop header
LB: loop body
LE: loop exit
PB: predicated region body
PF: predicated region fallthrough
CT: control target
= control target key end

     0   :  { %8 = vsyncpa [#allocation5], 0  ;;  %s1168_s0 = inlined_call_operand.hbm [shape: f32[2,4,8,256], index: 0, kind: input, shape index: {}]   ;;  %s1169_s1 = inlined_call_operand.vmem [shape: f32[2,4], index: 1, kind: input, shape index: {}]   ;;  %s1170_s2 = inlined_call_operand.vmem [shape: f32[4,2], index: 2, kind: input, shape index: {}]   ;;  %s1171_s3 = inlined_call_operand.hbm [shape: f32[2,4,8], index: 3, kind: output, shape index: {}]  }
   0x1   :  { %10 = vsyncpa [#allocation5 + $0x1], 0 }
   0x2   :  { %11 = vsyncpa [#allocation6], 0 }
   0x3   :  { %13 = vsyncpa [#allocation6 + $0x1], 0  ;;  %s935_s12 = smov 0   ;;  %s937_s13 = smov 0  }
   0x4   :  { %s939_s14 = smov 0   ;;  %s941_s15 = smov 0  }
   0x5   :  { %s943_s16 = smov 0   ;;  %s945_s17 = smov 0  }
   0x6   :  { %s947_s18 = smov 0   ;;  %s949_s19 = smov 0  }
   0x7   :  { %s951_s20 = smov 0   ;;  %s953_s21 = smov 0  }
   0x8   :  { %s955_s22 = smov 0  }
   0x9 LB: > { %s605_s23 = sadd.s32 4294967295, %s905_s22   ;;  %s606_s24 = sadd.s32 4294967294, %s905_s22   ;;  %s905_s22 = sphi %s955_s22, %s19_s22   ;;  %s901_s21 = sphi %s953_s21, %s1195_s21   ;;  %s897_s20 = sphi %s951_s20, %s1194_s20   ;;  %s893_s19 = sphi %s949_s19, %s1193_s19   ;;  %s889_s18 = sphi %s947_s18, %s1192_s18   ;;  %s885_s17 = sphi %s945_s17, %s1191_s17   ;;  %s881_s16 = sphi %s943_s16, %s1190_s16   ;;  %s877_s15 = sphi %s941_s15, %s1189_s15   ;;  %s873_s14 = sphi %s939_s14, %s1188_s14   ;;  %s869_s13 = sphi %s937_s13, %s1187_s13   ;;  %s865_s12 = sphi %s935_s12, %s1186_s12  }
   0xa   : > { %s28_s25 = sadd.s32 1, %s897_s20  ;;  %s31_s26 = sadd.s32 1, %s901_s21 }
   0xb   : > { %p29_p0 = scmp.ge.s32.totalorder %s28_s25, 2  ;;  %s40_s27 = sadd.s32 1, %s885_s17 }
   0xc   : > { %p47_p1 = scmp.ne.s32.totalorder %s885_s17, %s881_s16  ;;  %p48_p2 = scmp.eq.s32.totalorder %s905_s22, 0 }
   0xd   : > { %s1197_s25 = smov (%p29_p0, %s28_s25), 0  ;;  %s1199_s26 = smov (!%p29_p0, %s31_s26), %s901_s21 }
   0xe   : > { %1175 = sst [smem:[#allocation10_spill]] %s1197_s25  ;;  %s36_s28 = ssub.s32 %s897_s20, %s1197_s25 }
   0xf   : > { %p1001_p3 = por %p48_p2, %p47_p1  ;;  %p33_p4 = scmp.ge.s32.totalorder %s1199_s26, 2 }
  0x10   : > { %p53_p5 = scmp.ne.s32.totalorder %s881_s16, %s877_s15  ;;  %p54_p6 = scmp.eq.s32.totalorder %s605_s23, 0 }
  0x11   : > { %s108_s30 = sadd.s32 1, %s873_s14  ;;  %s1201_s26 = smov (%p33_p4, %s1199_s26), 0 }
  0x12   : > { %1177 = sst [smem:[#allocation11_spill]] %s1201_s26  ;;  %p1009_p7 = por %p54_p6, %p53_p5 }
  0x13   : > { %p118_p8 = scmp.ne.s32.totalorder %s873_s14, %s869_s13  ;;  %s35_s5 = ssub.s32 %s901_s21, %s1201_s26 }
  0x14   : > { %p119_p9 = scmp.eq.s32.totalorder %s605_s23, 3  ;;  %s37_s6 = sor.u32 %s36_s28, %s35_s5 }
  0x15   : > { %p106_p10 = scmp.eq.s32.totalorder %s35_s5, 0  ;;  %p38_p11 = scmp.eq.s32.totalorder %s37_s6, 0 }
  0x16   : > { %p1017_p12 = por %p119_p9, %p118_p8  ;;  %p124_p13 = scmp.ne.s32.totalorder %s869_s13, %s865_s12 }
  0x17   : > { %s1022_s8 = scalar_select %p106_p10, %s873_s14, %s108_s30  }
  0x18   : > { %s1179_s7 = scalar_select %p1017_p12, 1, 0 }
  0x19   : > { %s1025_s9 = scalar_select %p38_p11, %s885_s17, %s40_s27  }
  0x1a   : > { %p125_p0 = scmp.eq.s32.totalorder %s606_s24, 3  ;;  %p653_p1 = scmp.lt.s32.totalorder %s905_s22, 4 }
  0x1b   : > { %s151_s11 = sand.u32 1, %s885_s17   ;;  %s610_s23 = sshll.u32 %s901_s21, 3 }
  0x1c   : > { %p1030_p2 = por %p125_p0, %p124_p13  ;;  %s609_s15 = sshll.u32 %s151_s11, 5 }
  0x1d   : > { %s160_s28 = sadd.s32 %s897_s20, %s610_s23  ;;  %s155_s5 = scalar_lea.vmem [#allocation4], %s609_s15 }
  0x1e   : > { %s1180_s10 = scalar_select %p1030_p2, 1, 0 }
  0x1f   : > { %s163_s6 = sshll.u32 %s155_s5, 4  ;;  %s611_s26 = sshll.u32 %s160_s28, 7  ;;  %s1037_s6 = int_to_ptr.vmem [resolvable:$true] %s163_s6 }
  0x20   : > { %s1042_s27 = scalar_lea.hbm %s1168_s0, %s611_s26  ;;  %p1046_p4 = pnand %p653_p1, %p1001_p3 }
  0x21   : > { %s1050_s15 = scalar_lea.sflag [#allocation5], %s151_s11  ;;  %s753_s23 = scalar_lea.hbm %s1042_s27, 512 }
  0x22   : > { %p754_p5 = scmp.ne.s32.totalorder %s1042_s27, %s753_s23  ;;  %p755_p6 = pneg %p1046_p4 }
  0x23   : > { %s758_s29 = scalar_lea.hbm %s1168_s0, 2048  ;;  %p759_p3 = scmp.lt.u32.totalorder %s1042_s27, %s1168_s0 }
  0x24   : > { %p756_p8 = pnand %p755_p6, %p754_p5  ;;  %p760_p10 = scmp.lt.u32.totalorder %s758_s29, %s753_s23 }
  0x25   : > { %p762_p13 = scmp.lt.u32.totalorder %s753_s23, %s1042_s27 }
  0x26   : > { %p757_p9 = pneg %p756_p8  ;;  %p761_p11 = por %p760_p10, %p759_p3 }
  0x28   : > { %p763_p0 = por %p762_p13, %p761_p11 }
  0x2a   : > { %p764_p1 = pnand %p763_p0, %p757_p9 }
  0x2c   : > { %767 = shalt.err (!%p764_p1)
}
  0x2d   : > { %s768_s11 = scalar_lea.vmem %s1037_s6, 512  ;;  %s907_s30 = smov [#allocation4]  }
  0x2e   : > { %p769_p5 = scmp.ne.s32.totalorder %s1037_s6, %s768_s11  ;;  %s773_s25 = sshll.u32 %s907_s30, 4  ;;  %s774_s25 = int_to_ptr.vmem [resolvable:$false] %s773_s25 }
  0x2f   : > { %s775_s26 = scalar_lea.vmem %s774_s25, 1024  ;;  %p776_p12 = scmp.lt.s32.totalorder %s1037_s6, %s774_s25 }
  0x30   : > { %p771_p8 = pnand %p769_p5, %p755_p6  ;;  %p777_p3 = scmp.lt.s32.totalorder %s775_s26, %s768_s11 }
  0x32   : > { %p772_p2 = pneg %p771_p8  ;;  %p778_p10 = por %p777_p3, %p776_p12 }
  0x34   : > { %p779_p11 = pnand %p778_p10, %p772_p2 }
  0x36   : > { %782 = shalt.err (!%p779_p11)
}
  0x37   : > { %s908_s23 = smov 256   ;;  %s909_s29 = smov 128  }
  0x38   : > { %s910_s28 = smov 8   ;;  %p612_p6 = scmp.ge.s32.totalorder %s905_s22, 1 }
  0x39   : > { %648 = dma.hbm_to_vmem [thread:$0]  (!%p1046_p4), %s1042_s27, 512, %s1037_s6, %s1050_s15, %s908_s23, %s909_s29, %s910_s28  }
  0x3a   : > { %p171_p9 = scmp.lt.s32.totalorder %s905_s22, 5 }
  0x3c   : > { %p172_p13 = pnand %p612_p6, %p171_p9 }
  0x3d   : > { %s177_s5 = sand.u32 (!%p172_p13), 1, %s881_s16  }
  0x3e   : > { %175 = sbr.rel (%p172_p13) target bundleno = 847 (0x34f), region = 32  ;;  %s613_s11 = sshll.u32 (!%p172_p13), %s177_s5, 5 }
  0x3f   : > { %s178_s30 = scalar_lea.sflag (!%p172_p13), [#allocation5], %s177_s5  ;;  %s181_s25 = scalar_lea.vmem (!%p172_p13), [#allocation4], %s613_s11 }
  0x45   : > { %856 = dma.done.wait (%p1009_p7), %s178_s30, 512  }
  0x46   : > { %858 = vsyncadd (%p1009_p7), %s178_s30, 4294966784  ;;  %s201_s26 = sand.u32 1, %s869_s13   ;;  %v204_v0 = vld [vmem:[%s181_s25] sm:$0xff]  ;;  %v205_v1 = vld [vmem:[%s181_s25 + $0x8] sm:$0xff]  ;;  %p615_p12 = scmp.ne.s32.totalorder %s889_s18, 0 }
  0x47   : > { %s1088_s6 = sshll.u32 %s201_s26, 2  ;;  %v206_v2 = vld [vmem:[%s181_s25 + $0x10] sm:$0xff]  ;;  %v207_v3 = vld [vmem:[%s181_s25 + $0x18] sm:$0xff]  ;;  %212 = vst [vmem:[#allocation2] sm:$0xff] (!%p615_p12), %v204_v0  ;;  %213 = vst [vmem:[#allocation2 + $0x8] sm:$0xff] (!%p615_p12), %v205_v1 }
  0x48   : > { %s203_s27 = scalar_lea.vmem [#allocation7], %s1088_s6  ;;  %211 = sbr.rel (%p615_p12) target bundleno = 79 (0x4f), region = 40  ;;  %214 = vst [vmem:[#allocation2 + $0x10] sm:$0xff] (!%p615_p12), %v206_v2  ;;  %215 = vst [vmem:[#allocation2 + $0x18] sm:$0xff] (!%p615_p12), %v207_v3 }
  0x49   : > { %216 = vst [vmem:[#allocation3] sm:$0xff] (!%p615_p12), %v204_v0  ;;  %217 = vst [vmem:[#allocation3 + $0x8] sm:$0xff] (!%p615_p12), %v205_v1 }
  0x4a   : > { %218 = vst [vmem:[#allocation3 + $0x10] sm:$0xff] (!%p615_p12), %v206_v2  ;;  %219 = vst [vmem:[#allocation3 + $0x18] sm:$0xff] (!%p615_p12), %v207_v3 }
  0x4f PF: > { %p616_p7 = scmp.le.s32.totalorder %s889_s18, 0 }
  0x50   : > { %v224_v4 = vld [vmem:[#allocation2] sm:$0xff] (!%p616_p7)  ;;  %v225_v5 = vld [vmem:[#allocation2 + $0x8] sm:$0xff] (!%p616_p7)  ;;  %v226_v6 = vld [vmem:[#allocation2 + $0x10] sm:$0xff] (!%p616_p7) }
  0x51   : > { %223 = sbr.rel (%p616_p7) target bundleno = 88 (0x58), region = 44  ;;  %v228_v7 = vadd.f32 (!%p616_p7), %v224_v4, %v204_v0  ;;  %v229_v8 = vadd.f32 (!%p616_p7), %v225_v5, %v205_v1  ;;  %v230_v9 = vadd.f32 (!%p616_p7), %v226_v6, %v206_v2  ;;  %v227_v10 = vld [vmem:[#allocation2 + $0x18] sm:$0xff] (!%p616_p7)  ;;  %v236_v11 = vld [vmem:[#allocation3] sm:$0xff] (!%p616_p7)  ;;  %v237_v12 = vld [vmem:[#allocation3 + $0x8] sm:$0xff] (!%p616_p7) }
  0x52   : > { %v231_v13 = vadd.f32 (!%p616_p7), %v227_v10, %v207_v3  ;;  %v240_v14 = vmax.f32 (!%p616_p7), %v236_v11, %v204_v0  ;;  %v241_v15 = vmax.f32 (!%p616_p7), %v237_v12, %v205_v1  ;;  %v238_v16 = vld [vmem:[#allocation3 + $0x10] sm:$0xff] (!%p616_p7)  ;;  %v239_v17 = vld [vmem:[#allocation3 + $0x18] sm:$0xff] (!%p616_p7) }
  0x53   : > { %232 = vst [vmem:[#allocation2] sm:$0xff] (!%p616_p7), %v228_v7  ;;  %233 = vst [vmem:[#allocation2 + $0x8] sm:$0xff] (!%p616_p7), %v229_v8  ;;  %v242_v18 = vmax.f32 (!%p616_p7), %v238_v16, %v206_v2  ;;  %v243_v19 = vmax.f32 (!%p616_p7), %v239_v17, %v207_v3 }
  0x54   : > { %234 = vst [vmem:[#allocation2 + $0x10] sm:$0xff] (!%p616_p7), %v230_v9  ;;  %235 = vst [vmem:[#allocation2 + $0x18] sm:$0xff] (!%p616_p7), %v231_v13 }
  0x55   : > { %244 = vst [vmem:[#allocation3] sm:$0xff] (!%p616_p7), %v240_v14  ;;  %245 = vst [vmem:[#allocation3 + $0x8] sm:$0xff] (!%p616_p7), %v241_v15 }
  0x56   : > { %246 = vst [vmem:[#allocation3 + $0x10] sm:$0xff] (!%p616_p7), %v242_v18  ;;  %247 = vst [vmem:[#allocation3 + $0x18] sm:$0xff] (!%p616_p7), %v243_v19 }
  0x58 PF: > { %p617_p2 = scmp.ne.s32.totalorder %s889_s18, 1 }
  0x59   : > { %v911_v28 = vmov (!%p617_p2), 0.0   ;;  %vm912_vm0 = vmmov (!%p617_p2), 0   ;;  %v284_v29 = vlaneseq (!%p617_p2)  ;;  %vm302_vm1 = vcmask (!%p617_p2), 1041409   ;;  %v336_v61 = vld [vmem:[%s1169_s1] sm:$0x3] (!%p617_p2)  ;;  %s913_s23 = smov (!%p617_p2), 120  }
  0x5a   : > { %251 = sbr.rel (%p617_p2) target bundleno = 822 (0x336), region = 48  ;;  %v252_v21 = vld [vmem:[#allocation2] sm:$0xff] (!%p617_p2)  ;;  %v253_v23 = vld [vmem:[#allocation2 + $0x8] sm:$0xff] (!%p617_p2)  ;;  %631 = vmatprep.subr.mxu0 (!%p617_p2), %v911_v28  ;;  %636 = vmatprep.subr.mxu1 (!%p617_p2), %v911_v28  ;;  %vm304_vm2 = vcmask (!%p617_p2), 1042434   ;;  %vm306_vm3 = vcmask (!%p617_p2), 1043459   ;;  %vm334_vm4 = vcmask (!%p617_p2), 64512  }
  0x5b   : > { %v254_v20 = vld [vmem:[#allocation2 + $0x10] sm:$0xff] (!%p617_p2)  ;;  %256 = vadd.xlane.f32.xlu0 (!%p617_p2), %v252_v21  ;;  %v255_v22 = vld [vmem:[#allocation2 + $0x18] sm:$0xff] (!%p617_p2)  ;;  %633 = vmatprep.mubr.msk.f32.mxu0 (!%p617_p2), %vm912_vm0, %v911_v28  ;;  %v285_v30 = vand.u32 (!%p617_p2), 127, %v284_v29  ;;  %v287_v31 = vshrl.u32 (!%p617_p2), %v284_v29, 7  ;;  %vm341_vm5 = vcmask (!%p617_p2), 1043456   ;;  %vm337_vm6 = vcmask (!%p617_p2), 31744  }
  0x5c   : > { %260 = vadd.xlane.f32.xlu1 (!%p617_p2), %v254_v20  ;;  %v269_v24 = vld [vmem:[#allocation3 + $0x8] sm:$0xff] (!%p617_p2)  ;;  %v268_v25 = vld [vmem:[#allocation3] sm:$0xff] (!%p617_p2)  ;;  %638 = vmatprep.mubr.msk.f32.mxu1 (!%p617_p2), %vm912_vm0, %v911_v28  ;;  %vm421_vm7 = vcmask (!%p617_p2), 1041408   ;;  %vm417_vm8 = vcmask (!%p617_p2), 15360   ;;  %vm506_vm9 = vcmask (!%p617_p2), 60416  }
  0x5d   : > { %v270_v26 = vld [vmem:[#allocation3 + $0x10] sm:$0xff] (!%p617_p2)  ;;  %v271_v27 = vld [vmem:[#allocation3 + $0x18] sm:$0xff] (!%p617_p2)  ;;  %v313_v34 = vadd.s32 (!%p617_p2), 4294967288, %v285_v30  ;;  %v288_v35 = vsub.s32 (!%p617_p2), %v285_v30, %v287_v31  ;;  %v416_v2 = vld [vmem:[%s1170_s2] sm:$0xf] (!%p617_p2) }
  0x5f   : > { %258 = vadd.xlane.f32.xlu0 (!%p617_p2), %v253_v23  ;;  %v316_v40 = vsub.s32 (!%p617_p2), %v313_v34, %v287_v31 }
  0x60   : > { %262 = vadd.xlane.f32.xlu1 (!%p617_p2), %v255_v22 }
  0x63   : > { %272 = vmax.xlane.f32.xlu0 %v268_v25 }
  0x64   : > { %274 = vmax.xlane.f32.xlu1 %v269_v24 }
  0x67   : > { %276 = vmax.xlane.f32.xlu0 %v270_v26 }
  0x68   : > { %278 = vmax.xlane.f32.xlu1 %v271_v27 }
  0xe8   : > { %v257_v33 = vpop.xlane.xlu0 %256 }
  0xe9   : > { %v261_v32 = vpop.xlane.xlu1 %260  ;;  %v264_v36 = vmul.f32 0.00390625, %v257_v33 }
  0xea   : > { %v266_v41 = vmul.f32 0.00390625, %v261_v32 }
  0xeb   : > { %v289_v43 = vrot.slane %v264_v36, %v288_v35 }
  0xec   : > { %v259_v38 = vpop.xlane.xlu0 %258  ;;  %v297_v50 = vrot.slane %v266_v41, %v288_v35 }
  0xed   : > { %v263_v37 = vpop.xlane.xlu1 %262  ;;  %v265_v39 = vmul.f32 0.00390625, %v259_v38 }
  0xee   : > { %v267_v44 = vmul.f32 0.00390625, %v263_v37 }
  0xef   : > { %v293_v42 = vrot.slane %v265_v39, %v288_v35 }
  0xf0   : > { %v273_v46 = vpop.xlane.xlu0 %272  ;;  %v301_v51 = vrot.slane %v267_v44, %v288_v35 }
  0xf1   : > { %v275_v45 = vpop.xlane.xlu1 %274  ;;  %v303_v47 = vsel %vm302_vm1, %v293_v42, %v289_v43  ;;  %v317_v49 = vrot.slane %v273_v46, %v316_v40 }
  0xf2   : > { %v321_v48 = vrot.slane %v275_v45, %v316_v40  ;;  %v305_v56 = vsel %vm304_vm2, %v297_v50, %v303_v47 }
  0xf3   : > { %v307_v59 = vsel %vm306_vm3, %v301_v51, %v305_v56 }
  0xf4   : > { %v277_v52 = vpop.xlane.xlu0 %276  ;;  %v330_v57 = vsel %vm302_vm1, %v321_v48, %v317_v49 }
  0xf5   : > { %v279_v53 = vpop.xlane.xlu1 %278  ;;  %v325_v54 = vrot.slane %v277_v52, %v316_v40 }
  0xf6   : > { %v329_v55 = vrot.slane %v279_v53, %v316_v40 }
  0xf7   : > { %v331_v58 = vsel %vm304_vm2, %v325_v54, %v330_v57 }
  0xf8   : > { %v332_v60 = vsel %vm306_vm3, %v329_v55, %v331_v58 }
  0xf9   : > { %v335_v62 = vsel %vm334_vm4, %v307_v59, %v332_v60 }
  0xfa   : > { %632 = vmatpush3.msk.msra.mxu0 %vm341_vm5, %v335_v62 }
  0xfb   : > { %634 = vmatmul.mubr.msk.f32.vlgmr.msra.gmra.mrb[0].mxu0 %vm337_vm6, %v336_v61 }
 0x1ce   : > { %v411_v63 = vpop.f32.mrb[0].mxu0 }
 0x1cf   : > { %v415_v0 = vmax.f32 %v411_v63, 0.0  ;;  %v635_v1 = vpop.f32.mrb[1].mxu0 }
 0x1d1   : > { %637 = vmatpush3.msk.msra.mxu1 %vm421_vm7, %v415_v0 }
 0x1d2   : > { %639 = vmatmul.mubr.msk.f32.vlgmr.msra.gmra.mrb[0].mxu1 %vm417_vm8, %v416_v2 }
 0x2a5   : > { %v491_v3 = vpop.f32.mrb[0].mxu1 }
 0x2a6   : > { %496 = vrot.lane.b32.xlu0 %v491_v3, %s913_s23  ;;  %v640_v4 = vpop.f32.mrb[1].mxu1 }
 0x318   : > { %v497_v5 = vpop.permute.xlu0 %496 }
 0x319   : > { %v499_v6 = vadd.f32 %v497_v5, %v491_v3 }
 0x31b   : > { %v622_v7 = vmul.f32 -1.442695, %v499_v6 }
 0x31d   : > { %749 = vpow2.f32 %v622_v7 }
 0x327   : > { %v750_v8 = vpop.eup %749 }
 0x328   : > { %v503_v9 = vadd.f32 1.0, %v750_v8 }
 0x32a   : > { %751 = vrcp.f32 %v503_v9 }
 0x334   : > { %v752_v10 = vpop.eup %751 }
 0x335   : > { %507 = vst.msk [vmem:[%s203_s27] sm:$0xf] %vm506_vm9, %v752_v10 }
 0x336 PF: > { %s624_s29 = sshll.u32 %s893_s19, 6  ;;  %s522_s30 = sshll.u32 %s203_s27, 4  ;;  %s523_s30 = int_to_ptr.vmem [resolvable:$true] %s522_s30 }
 0x337   : > { %s1108_s11 = scalar_lea.hbm %s1171_s3, %s624_s29  ;;  %s509_s25 = scalar_lea.sflag [#allocation6], %s201_s26 }
 0x338   : > { %s783_s18 = scalar_lea.vmem %s523_s30, 64  ;;  %p1182_p0 = scmp.ne.s32.totalorder %s1179_s7, 0 }
 0x339   : > { %p784_p4 = scmp.ne.s32.totalorder %s523_s30, %s783_s18  ;;  %s914_s4 = smov [#allocation7]  }
 0x33a   : > { %s787_s24 = sshll.u32 %s914_s4, 4  ;;  %s788_s24 = int_to_ptr.vmem [resolvable:$false] %s787_s24 }
 0x33b   : > { %p785_p1 = pnand %p784_p4, %p1182_p0  ;;  %s789_s15 = scalar_lea.vmem %s788_s24, 128 }
 0x33c   : > { %p790_p8 = scmp.lt.s32.totalorder %s523_s30, %s788_s24  ;;  %p791_p3 = scmp.lt.s32.totalorder %s789_s15, %s783_s18 }
 0x33d   : > { %p786_p5 = pneg %p785_p1 }
 0x33e   : > { %p792_p10 = por %p791_p3, %p790_p8 }
 0x340   : > { %p793_p11 = pnand %p792_p10, %p786_p5 }
 0x342   : > { %796 = shalt.err (!%p793_p11)
}
 0x343   : > { %s797_s19 = scalar_lea.hbm %s1108_s11, 64  ;;  %s801_s27 = scalar_lea.hbm %s1171_s3, 128 }
 0x344   : > { %p798_p6 = scmp.ne.s32.totalorder %s1108_s11, %s797_s19  ;;  %p802_p12 = scmp.lt.u32.totalorder %s1108_s11, %s1171_s3 }
 0x345   : > { %p803_p7 = scmp.lt.u32.totalorder %s801_s27, %s797_s19  ;;  %p805_p4 = scmp.lt.u32.totalorder %s797_s19, %s1108_s11 }
 0x346   : > { %p799_p9 = pnand %p798_p6, %p1182_p0 }
 0x347   : > { %p804_p2 = por %p803_p7, %p802_p12 }
 0x348   : > { %p800_p13 = pneg %p799_p9 }
 0x349   : > { %p806_p1 = por %p805_p4, %p804_p2 }
 0x34b   : > { %p807_p5 = pnand %p806_p1, %p800_p13 }
 0x34d   : > { %810 = shalt.err (!%p807_p5)
}
 0x34e   : > { %643 = dma.vmem_to_hbm [thread:$0]  (%p1182_p0), %s523_s30, 64, %s1108_s11, %s509_s25  }
 0x34f PF: > { %p654_p8 = scmp.ge.s32.totalorder %s905_s22, 2  ;;  %s534_s28 = sand.u32 1, %s865_s12  }
 0x350   : > { %p1183_p3 = scmp.ne.s32.totalorder %s1180_s10, 0  ;;  %s535_s5 = scalar_lea.sflag [#allocation6], %s534_s28 }
 0x352   : > { %p650_p10 = pnand %p654_p8, %p1183_p3 }
 0x354   : > { %860 = dma.done.wait (!%p650_p10), %s535_s5, 64  }
 0x355   : > { %862 = vsyncadd (!%p650_p10), %s535_s5, 4294967232  ;;  %s19_s22 = sadd.s32 1, %s905_s22   ;;  %s1184_s7 = sld [smem:[#allocation10_spill]] }
 0x356   : > { %p16_p11 = scmp.ge.s32.totalorder %s19_s22, 6   ;;  %s1185_s11 = sld [smem:[#allocation11_spill]] }
 0x357   : > { %s1186_s12 = smov %s869_s13  ;;  %s1187_s13 = smov %s873_s14 }
 0x358   : > { %s1188_s14 = smov %s1022_s8  ;;  %s1189_s15 = smov %s881_s16 }
 0x359   : > { %s1190_s16 = smov %s885_s17  ;;  %s1191_s17 = smov %s1025_s9 }
 0x35a   : > { %s1192_s18 = smov %s897_s20  ;;  %s1193_s19 = smov %s901_s21 }
 0x35b   : > { %s1194_s20 = smov %s1184_s7  ;;  %18 = sbr.rel (!%p16_p11) target bundleno = 9 (0x9), region = 89 }
 0x35c   : > { %s1195_s21 = smov %s1185_s11 }
 0x362   :  { %540 = vsyncpa [#allocation5], 1 }
 0x363   :  { %542 = vsyncpa [#allocation5 + $0x1], 1 }
 0x364   :  { %543 = vsyncpa [#allocation6], 1 }
 0x365   :  { %545 = vsyncpa [#allocation6 + $0x1], 1 }

</bundles_post_ra>
